<compile_context>
chip_gen: v7x
topology: tpu7x:2x2x1
jax: 0.10.0
libtpu: 0.0.40
codegen_flags: <defaults>
</compile_context>

<pallas_src>
import jax
import jax.numpy as jnp
from jax import lax
from jax.experimental import pallas as pl
from jax.experimental.pallas import tpu as pltpu

# ----------------------------- configuration --------------------------------
N_FEATURES = 4
HIDDEN = 32          # hidden_size
N_LAYERS = 1         # single layer -> nn.LSTM inter-layer dropout is a no-op
BIDIRECTIONAL = False
N_DIR = 2 if BIDIRECTIONAL else 1

# Packed-parameter row layout (rows of a (R, 4H) f32 buffer):
#   rows 0:F        -> weight_ih_l0.T            (F, 4H)
#   rows 8:8+H      -> weight_hh_l0.T            (H, 4H)
#   row  8+H        -> bias_ih_l0 + bias_hh_l0   (1, 4H)
#   row  8+H+1      -> linear.weight (as a row)  lanes 0:H
#   row  8+H+2      -> linear.bias               lane 0
_R_WHH = 8


def pack_params(params):
    """One-time (init-time) packing of all weights into a single operand."""
    wih, whh, bih, bhh, wlin, blin = params
    H = whh.shape[1]
    F = wih.shape[1]
    assert F <= _R_WHH, "packed layout assumes n_features <= 8"
    G = 4 * H
    rows = ((_R_WHH + H + 3 + 7) // 8) * 8
    p = jnp.zeros((rows, G), jnp.float32)
    p = p.at[0:F, :].set(wih.T.astype(jnp.float32))
    p = p.at[_R_WHH:_R_WHH + H, :].set(whh.T.astype(jnp.float32))
    p = p.at[_R_WHH + H, :].set((bih + bhh).astype(jnp.float32))
    p = p.at[_R_WHH + H + 1, 0:H].set(wlin.reshape(-1).astype(jnp.float32))
    p = p.at[_R_WHH + H + 2, 0].set(blin.reshape(())[()].astype(jnp.float32))
    return p


# ------------------------------- kernel --------------------------------------
def _lstm_linear_kernel(x_ref,      # (B*T, F)  batch-major rows (row = b*T+t)
                        h0_ref,     # (1, B, H)
                        c0_ref,     # (1, B, H)
                        p_ref,      # (R, 4H)   packed parameters (see layout)
                        out_ref,    # (1, B*T)  logits, batch-major lanes
                        hT_ref,     # (1, B, H)
                        cT_ref):    # (1, B, H)
    B = h0_ref.shape[1]
    H = h0_ref.shape[2]
    F = x_ref.shape[1]
    T = x_ref.shape[0] // B

    r_bias = _R_WHH + H
    r_wlin = r_bias + 1
    r_blin = r_wlin + 1

    # ---- loop-invariant operands: static slices of the single packed DMA ----
    wih = p_ref[0:F, :]                      # (F, 4H)
    whh = p_ref[_R_WHH:_R_WHH + H, :]        # (H, 4H)
    bias = p_ref[r_bias:r_bias + 1, :]       # (1, 4H)
    wlin = p_ref[r_wlin:r_wlin + 1, 0:H]     # (1, H)
    blin = p_ref[r_blin:r_blin + 1, 0:1]     # (1, 1)

    # Input projection + combined bias for ALL timesteps in one MXU pass.
    xg = (jnp.dot(x_ref[...], wih, preferred_element_type=jnp.float32)
          + bias)                            # (B*T, 4H), batch-major rows

    h = h0_ref[0]                            # (B, H) carried as values
    c = c0_ref[0]
    h_list = []

    # ---- recurrent loop, fully unrolled (T static & small) ------------------
    for t in range(T):
        # gather this step's rows (b*T + t); static slices, off the h->h chain
        x_t = jnp.concatenate(
            [xg[b * T + t:b * T + t + 1, :] for b in range(B)], axis=0)  # (B, 4H)
        # gate pre-activations, PyTorch gate order [i, f, g, o]
        gates = x_t + jnp.dot(h, whh, preferred_element_type=jnp.float32)
        # 2 EUP pushes over the full 4H lanes instead of 4 narrow ones.
        sig_all = jax.nn.sigmoid(gates)
        tanh_all = jnp.tanh(gates)
        i_g = sig_all[:, 0 * H:1 * H]
        f_g = sig_all[:, 1 * H:2 * H]
        g_g = tanh_all[:, 2 * H:3 * H]
        o_g = sig_all[:, 3 * H:4 * H]

        c = f_g * c + i_g * g_g
        h = o_g * jnp.tanh(c)
        h_list.append(h)                     # kept in registers, no scratch

    hT_ref[0] = h
    cT_ref[0] = c

    # ---- fused output projection Linear(H -> 1) -----------------------------
    # Batch-major hidden history (row b*T + t) so the wrapper output is a pure
    # reshape; logits written as one lane-dense (1, B*T) row (single store).
    h_all = jnp.concatenate(
        [h_list[t][b:b + 1, :] for b in range(B) for t in range(T)],
        axis=0)                              # (B*T, H)
    out_row = lax.dot_general(
        wlin, h_all, (((1,), (1,)), ((), ())),
        preferred_element_type=jnp.float32) + blin        # (1, B*T)
    out_ref[...] = out_row


# ------------------------------- wrapper --------------------------------------
@jax.jit
def network_midi_forward(x_btf, h0, c0, packed_params):
    """Forward pass of NetworkMidi (LSTM, 1 layer, unidirectional).

    x_btf: (B, T, 4) float32, batch_first like PyTorch.
    h0, c0: (1, B, H) float32.  NOTE: h0/c0 are aliased to hT/cT inside the
    kernel (standard donation semantics for the pallas_call operands).
    packed_params: output of pack_params(...) — computed once at init time.
    Returns (out, (hT, cT)) with out: (B, T, 1).
    """
    B, T, F = x_btf.shape
    H = h0.shape[2]

    # batch-major flatten (free reshape; no per-call transpose)
    x2 = x_btf.reshape(B * T, F).astype(jnp.float32)

    cost = pl.CostEstimate(
        flops=2 * T * B * (F * 4 * H + H * 4 * H + H),
        transcendentals=T * B * 9 * H,
        bytes_accessed=4 * (x2.size + 2 * h0.size + 2 * c0.size
                            + packed_params.size + T * B),
    )

    out_row, hT, cT = pl.pallas_call(
        _lstm_linear_kernel,
        out_shape=(
            jax.ShapeDtypeStruct((1, B * T), jnp.float32),
            jax.ShapeDtypeStruct((1, B, H), jnp.float32),
            jax.ShapeDtypeStruct((1, B, H), jnp.float32),
        ),
        in_specs=[pl.BlockSpec(memory_space=pltpu.MemorySpace.VMEM)] * 4,
        out_specs=(pl.BlockSpec(memory_space=pltpu.MemorySpace.VMEM),) * 3,
        # h0 -> hT, c0 -> cT: reuse the state buffers instead of fresh outputs.
        input_output_aliases={1: 1, 2: 2},
        cost_estimate=cost,
    )(x2, h0, c0, packed_params)

    out_bt1 = out_row.reshape(B, T, 1)       # batch-major row -> pure reshape
    return out_bt1, (hT, cT)


# ----------------------------- pure-JAX reference -----------------------------
def _reference_forward(x_btf, h0, c0, params):
    wih, whh, bih, bhh, wlin, blin = params

    def step(carry, x_t):
        h, c = carry
        gates = x_t @ wih.T + bih + h @ whh.T + bhh
        i_g, f_g, g_g, o_g = jnp.split(gates, 4, axis=-1)
        i_g = jax.nn.sigmoid(i_g)
        f_g = jax.nn.sigmoid(f_g)
        g_g = jnp.tanh(g_g)
        o_g = jax.nn.sigmoid(o_g)
        c = f_g * c + i_g * g_g
        h = o_g * jnp.tanh(c)
        return (h, c), h

    x_tbf = jnp.transpose(x_btf, (1, 0, 2))
    (hT, cT), hs = lax.scan(step, (h0[0], c0[0]), x_tbf)
    out = hs @ wlin.T + blin                                      # (T, B, 1)
    return jnp.transpose(out, (1, 0, 2)), (hT[None], cT[None])


# ------------------------------- main -----------------------------------------
if __name__ == "__main__":
    B, T, F, H = 2, 8, N_FEATURES, HIDDEN

    key = jax.random.PRNGKey(0)
    ks = jax.random.split(key, 9)
    bound = 1.0 / jnp.sqrt(H)  # matches PyTorch default uniform init range

    # LSTM layer-0 parameters (PyTorch shapes), deterministic init in-script.
    wih = jax.random.uniform(ks[0], (4 * H, F), jnp.float32, -bound, bound)
    whh = jax.random.uniform(ks[1], (4 * H, H), jnp.float32, -bound, bound)
    bih = jax.random.uniform(ks[2], (4 * H,), jnp.float32, -bound, bound)
    bhh = jax.random.uniform(ks[3], (4 * H,), jnp.float32, -bound, bound)
    # Linear(hidden_size * n_directions -> 1)
    wlin = jax.random.uniform(ks[4], (1, H * N_DIR), jnp.float32, -bound, bound)
    blin = jax.random.uniform(ks[5], (1,), jnp.float32, -bound, bound)
    params = (wih, whh, bih, bhh, wlin, blin)

    # One-time, init-style parameter packing (outside the per-call path).
    packed = pack_params(params)

    # Inputs: batch_first sequence + initial hidden state tuple (h0, c0).
    x = jax.random.normal(ks[6], (B, T, F), jnp.float32)
    h0 = jax.random.normal(ks[7], (N_LAYERS * N_DIR, B, H), jnp.float32)
    c0 = jax.random.normal(ks[8], (N_LAYERS * N_DIR, B, H), jnp.float32)

    out, (hT, cT) = network_midi_forward(x, h0, c0, packed)
    jax.block_until_ready((out, hT, cT))

    ref_out, (ref_hT, ref_cT) = _reference_forward(x, h0, c0, params)
    assert out.shape == (B, T, 1)
    assert hT.shape == (N_LAYERS * N_DIR, B, H)
    assert cT.shape == (N_LAYERS * N_DIR, B, H)
    assert jnp.allclose(out, ref_out, atol=1e-5, rtol=1e-5)
    assert jnp.allclose(hT, ref_hT, atol=1e-5, rtol=1e-5)
    assert jnp.allclose(cT, ref_cT, atol=1e-5, rtol=1e-5)

    print("KERNEL_OK")
</pallas_src>

<mosaic_0001>
module attributes {stable_mosaic.version = 11 : i64} {
  func.func @_lstm_linear_kernel(%arg0: memref<16x4xf32, #tpu.memory_space<vmem>>, %arg1: memref<1x2x32xf32, #tpu.memory_space<vmem>>, %arg2: memref<1x2x32xf32, #tpu.memory_space<vmem>>, %arg3: memref<48x128xf32, #tpu.memory_space<vmem>>, %arg4: memref<1x16xf32, #tpu.memory_space<vmem>>, %arg5: memref<1x2x32xf32, #tpu.memory_space<vmem>>, %arg6: memref<1x2x32xf32, #tpu.memory_space<vmem>>) attributes {dimension_semantics = [], scalar_prefetch = 0 : i64, scratch_operands = 0 : i64, tpu.core_type = #tpu.core_type<tc>} {
    %c0 = arith.constant 0 : index
    %c0_0 = arith.constant 0 : index
    %0 = vector.load %arg3[%c0, %c0_0] : memref<48x128xf32, #tpu.memory_space<vmem>>, vector<4x128xf32>
    %c8 = arith.constant 8 : index
    %c0_1 = arith.constant 0 : index
    %1 = vector.load %arg3[%c8, %c0_1] : memref<48x128xf32, #tpu.memory_space<vmem>>, vector<32x128xf32>
    %c40 = arith.constant 40 : index
    %c0_2 = arith.constant 0 : index
    %2 = vector.load %arg3[%c40, %c0_2] : memref<48x128xf32, #tpu.memory_space<vmem>>, vector<1x128xf32>
    %c41 = arith.constant 41 : index
    %c0_3 = arith.constant 0 : index
    %3 = vector.load %arg3[%c41, %c0_3] : memref<48x128xf32, #tpu.memory_space<vmem>>, vector<1x32xf32>
    %c42 = arith.constant 42 : index
    %c0_4 = arith.constant 0 : index
    %4 = vector.load %arg3[%c42, %c0_4] : memref<48x128xf32, #tpu.memory_space<vmem>>, vector<1x1xf32>
    %c0_5 = arith.constant 0 : index
    %c0_6 = arith.constant 0 : index
    %5 = vector.load %arg0[%c0_5, %c0_6] : memref<16x4xf32, #tpu.memory_space<vmem>>, vector<16x4xf32>
    %cst = arith.constant dense<0.000000e+00> : vector<16x128xf32>
    %6 = tpu.matmul %5, %0, %cst {dimension_numbers = #tpu.dot_dimension_numbers<[1], [0], [0], [1], [0, 0, 1, 1], [], []>} : vector<16x4xf32>, vector<4x128xf32>, vector<16x128xf32> -> vector<16x128xf32>
    %7 = vector.broadcast %2 : vector<1x128xf32> to vector<16x128xf32>
    %8 = arith.addf %6, %7 : vector<16x128xf32>
    %c0_7 = arith.constant 0 : index
    %c0_8 = arith.constant 0 : index
    %c0_9 = arith.constant 0 : index
    %9 = vector.load %arg1[%c0_7, %c0_8, %c0_9] : memref<1x2x32xf32, #tpu.memory_space<vmem>>, vector<1x2x32xf32>
    %10 = vector.shape_cast %9 : vector<1x2x32xf32> to vector<2x32xf32>
    %c0_10 = arith.constant 0 : index
    %c0_11 = arith.constant 0 : index
    %c0_12 = arith.constant 0 : index
    %11 = vector.load %arg2[%c0_10, %c0_11, %c0_12] : memref<1x2x32xf32, #tpu.memory_space<vmem>>, vector<1x2x32xf32>
    %12 = vector.shape_cast %11 : vector<1x2x32xf32> to vector<2x32xf32>
    %13 = vector.extract_strided_slice %8 {offsets = [0, 0], sizes = [1, 128], strides = [1, 1]} : vector<16x128xf32> to vector<1x128xf32>
    %14 = vector.extract_strided_slice %8 {offsets = [8, 0], sizes = [1, 128], strides = [1, 1]} : vector<16x128xf32> to vector<1x128xf32>
    %15 = tpu.concatenate %13, %14 in 0 : vector<1x128xf32>, vector<1x128xf32> -> vector<2x128xf32>
    %cst_13 = arith.constant dense<0.000000e+00> : vector<2x128xf32>
    %16 = tpu.matmul %10, %1, %cst_13 {dimension_numbers = #tpu.dot_dimension_numbers<[1], [0], [0], [1], [0, 0, 1, 1], [], []>} : vector<2x32xf32>, vector<32x128xf32>, vector<2x128xf32> -> vector<2x128xf32>
    %17 = arith.addf %15, %16 : vector<2x128xf32>
    %18 = arith.negf %17 : vector<2x128xf32>
    %19 = math.exp %18 : vector<2x128xf32>
    %cst_14 = arith.constant 1.000000e+00 : f32
    %20 = vector.broadcast %cst_14 : f32 to vector<2x128xf32>
    %21 = arith.addf %20, %19 : vector<2x128xf32>
    %22 = arith.divf %20, %21 : vector<2x128xf32>
    %23 = math.tanh %17 : vector<2x128xf32>
    %24 = vector.extract_strided_slice %22 {offsets = [0, 0], sizes = [2, 32], strides = [1, 1]} : vector<2x128xf32> to vector<2x32xf32>
    %25 = vector.extract_strided_slice %22 {offsets = [0, 32], sizes = [2, 32], strides = [1, 1]} : vector<2x128xf32> to vector<2x32xf32>
    %26 = vector.extract_strided_slice %23 {offsets = [0, 64], sizes = [2, 32], strides = [1, 1]} : vector<2x128xf32> to vector<2x32xf32>
    %27 = vector.extract_strided_slice %22 {offsets = [0, 96], sizes = [2, 32], strides = [1, 1]} : vector<2x128xf32> to vector<2x32xf32>
    %28 = arith.mulf %25, %12 : vector<2x32xf32>
    %29 = arith.mulf %24, %26 : vector<2x32xf32>
    %30 = arith.addf %28, %29 : vector<2x32xf32>
    %31 = math.tanh %30 : vector<2x32xf32>
    %32 = arith.mulf %27, %31 : vector<2x32xf32>
    %33 = vector.extract_strided_slice %8 {offsets = [1, 0], sizes = [1, 128], strides = [1, 1]} : vector<16x128xf32> to vector<1x128xf32>
    %34 = vector.extract_strided_slice %8 {offsets = [9, 0], sizes = [1, 128], strides = [1, 1]} : vector<16x128xf32> to vector<1x128xf32>
    %35 = tpu.concatenate %33, %34 in 0 : vector<1x128xf32>, vector<1x128xf32> -> vector<2x128xf32>
    %cst_15 = arith.constant dense<0.000000e+00> : vector<2x128xf32>
    %36 = tpu.matmul %32, %1, %cst_15 {dimension_numbers = #tpu.dot_dimension_numbers<[1], [0], [0], [1], [0, 0, 1, 1], [], []>} : vector<2x32xf32>, vector<32x128xf32>, vector<2x128xf32> -> vector<2x128xf32>
    %37 = arith.addf %35, %36 : vector<2x128xf32>
    %38 = arith.negf %37 : vector<2x128xf32>
    %39 = math.exp %38 : vector<2x128xf32>
    %cst_16 = arith.constant 1.000000e+00 : f32
    %40 = vector.broadcast %cst_16 : f32 to vector<2x128xf32>
    %41 = arith.addf %40, %39 : vector<2x128xf32>
    %42 = arith.divf %40, %41 : vector<2x128xf32>
    %43 = math.tanh %37 : vector<2x128xf32>
    %44 = vector.extract_strided_slice %42 {offsets = [0, 0], sizes = [2, 32], strides = [1, 1]} : vector<2x128xf32> to vector<2x32xf32>
    %45 = vector.extract_strided_slice %42 {offsets = [0, 32], sizes = [2, 32], strides = [1, 1]} : vector<2x128xf32> to vector<2x32xf32>
    %46 = vector.extract_strided_slice %43 {offsets = [0, 64], sizes = [2, 32], strides = [1, 1]} : vector<2x128xf32> to vector<2x32xf32>
    %47 = vector.extract_strided_slice %42 {offsets = [0, 96], sizes = [2, 32], strides = [1, 1]} : vector<2x128xf32> to vector<2x32xf32>
    %48 = arith.mulf %45, %30 : vector<2x32xf32>
    %49 = arith.mulf %44, %46 : vector<2x32xf32>
    %50 = arith.addf %48, %49 : vector<2x32xf32>
    %51 = math.tanh %50 : vector<2x32xf32>
    %52 = arith.mulf %47, %51 : vector<2x32xf32>
    %53 = vector.extract_strided_slice %8 {offsets = [2, 0], sizes = [1, 128], strides = [1, 1]} : vector<16x128xf32> to vector<1x128xf32>
    %54 = vector.extract_strided_slice %8 {offsets = [10, 0], sizes = [1, 128], strides = [1, 1]} : vector<16x128xf32> to vector<1x128xf32>
    %55 = tpu.concatenate %53, %54 in 0 : vector<1x128xf32>, vector<1x128xf32> -> vector<2x128xf32>
    %cst_17 = arith.constant dense<0.000000e+00> : vector<2x128xf32>
    %56 = tpu.matmul %52, %1, %cst_17 {dimension_numbers = #tpu.dot_dimension_numbers<[1], [0], [0], [1], [0, 0, 1, 1], [], []>} : vector<2x32xf32>, vector<32x128xf32>, vector<2x128xf32> -> vector<2x128xf32>
    %57 = arith.addf %55, %56 : vector<2x128xf32>
    %58 = arith.negf %57 : vector<2x128xf32>
    %59 = math.exp %58 : vector<2x128xf32>
    %cst_18 = arith.constant 1.000000e+00 : f32
    %60 = vector.broadcast %cst_18 : f32 to vector<2x128xf32>
    %61 = arith.addf %60, %59 : vector<2x128xf32>
    %62 = arith.divf %60, %61 : vector<2x128xf32>
    %63 = math.tanh %57 : vector<2x128xf32>
    %64 = vector.extract_strided_slice %62 {offsets = [0, 0], sizes = [2, 32], strides = [1, 1]} : vector<2x128xf32> to vector<2x32xf32>
    %65 = vector.extract_strided_slice %62 {offsets = [0, 32], sizes = [2, 32], strides = [1, 1]} : vector<2x128xf32> to vector<2x32xf32>
    %66 = vector.extract_strided_slice %63 {offsets = [0, 64], sizes = [2, 32], strides = [1, 1]} : vector<2x128xf32> to vector<2x32xf32>
    %67 = vector.extract_strided_slice %62 {offsets = [0, 96], sizes = [2, 32], strides = [1, 1]} : vector<2x128xf32> to vector<2x32xf32>
    %68 = arith.mulf %65, %50 : vector<2x32xf32>
    %69 = arith.mulf %64, %66 : vector<2x32xf32>
    %70 = arith.addf %68, %69 : vector<2x32xf32>
    %71 = math.tanh %70 : vector<2x32xf32>
    %72 = arith.mulf %67, %71 : vector<2x32xf32>
    %73 = vector.extract_strided_slice %8 {offsets = [3, 0], sizes = [1, 128], strides = [1, 1]} : vector<16x128xf32> to vector<1x128xf32>
    %74 = vector.extract_strided_slice %8 {offsets = [11, 0], sizes = [1, 128], strides = [1, 1]} : vector<16x128xf32> to vector<1x128xf32>
    %75 = tpu.concatenate %73, %74 in 0 : vector<1x128xf32>, vector<1x128xf32> -> vector<2x128xf32>
    %cst_19 = arith.constant dense<0.000000e+00> : vector<2x128xf32>
    %76 = tpu.matmul %72, %1, %cst_19 {dimension_numbers = #tpu.dot_dimension_numbers<[1], [0], [0], [1], [0, 0, 1, 1], [], []>} : vector<2x32xf32>, vector<32x128xf32>, vector<2x128xf32> -> vector<2x128xf32>
    %77 = arith.addf %75, %76 : vector<2x128xf32>
    %78 = arith.negf %77 : vector<2x128xf32>
    %79 = math.exp %78 : vector<2x128xf32>
    %cst_20 = arith.constant 1.000000e+00 : f32
    %80 = vector.broadcast %cst_20 : f32 to vector<2x128xf32>
    %81 = arith.addf %80, %79 : vector<2x128xf32>
    %82 = arith.divf %80, %81 : vector<2x128xf32>
    %83 = math.tanh %77 : vector<2x128xf32>
    %84 = vector.extract_strided_slice %82 {offsets = [0, 0], sizes = [2, 32], strides = [1, 1]} : vector<2x128xf32> to vector<2x32xf32>
    %85 = vector.extract_strided_slice %82 {offsets = [0, 32], sizes = [2, 32], strides = [1, 1]} : vector<2x128xf32> to vector<2x32xf32>
    %86 = vector.extract_strided_slice %83 {offsets = [0, 64], sizes = [2, 32], strides = [1, 1]} : vector<2x128xf32> to vector<2x32xf32>
    %87 = vector.extract_strided_slice %82 {offsets = [0, 96], sizes = [2, 32], strides = [1, 1]} : vector<2x128xf32> to vector<2x32xf32>
    %88 = arith.mulf %85, %70 : vector<2x32xf32>
    %89 = arith.mulf %84, %86 : vector<2x32xf32>
    %90 = arith.addf %88, %89 : vector<2x32xf32>
    %91 = math.tanh %90 : vector<2x32xf32>
    %92 = arith.mulf %87, %91 : vector<2x32xf32>
    %93 = vector.extract_strided_slice %8 {offsets = [4, 0], sizes = [1, 128], strides = [1, 1]} : vector<16x128xf32> to vector<1x128xf32>
    %94 = vector.extract_strided_slice %8 {offsets = [12, 0], sizes = [1, 128], strides = [1, 1]} : vector<16x128xf32> to vector<1x128xf32>
    %95 = tpu.concatenate %93, %94 in 0 : vector<1x128xf32>, vector<1x128xf32> -> vector<2x128xf32>
    %cst_21 = arith.constant dense<0.000000e+00> : vector<2x128xf32>
    %96 = tpu.matmul %92, %1, %cst_21 {dimension_numbers = #tpu.dot_dimension_numbers<[1], [0], [0], [1], [0, 0, 1, 1], [], []>} : vector<2x32xf32>, vector<32x128xf32>, vector<2x128xf32> -> vector<2x128xf32>
    %97 = arith.addf %95, %96 : vector<2x128xf32>
    %98 = arith.negf %97 : vector<2x128xf32>
    %99 = math.exp %98 : vector<2x128xf32>
    %cst_22 = arith.constant 1.000000e+00 : f32
    %100 = vector.broadcast %cst_22 : f32 to vector<2x128xf32>
    %101 = arith.addf %100, %99 : vector<2x128xf32>
    %102 = arith.divf %100, %101 : vector<2x128xf32>
    %103 = math.tanh %97 : vector<2x128xf32>
    %104 = vector.extract_strided_slice %102 {offsets = [0, 0], sizes = [2, 32], strides = [1, 1]} : vector<2x128xf32> to vector<2x32xf32>
    %105 = vector.extract_strided_slice %102 {offsets = [0, 32], sizes = [2, 32], strides = [1, 1]} : vector<2x128xf32> to vector<2x32xf32>
    %106 = vector.extract_strided_slice %103 {offsets = [0, 64], sizes = [2, 32], strides = [1, 1]} : vector<2x128xf32> to vector<2x32xf32>
    %107 = vector.extract_strided_slice %102 {offsets = [0, 96], sizes = [2, 32], strides = [1, 1]} : vector<2x128xf32> to vector<2x32xf32>
    %108 = arith.mulf %105, %90 : vector<2x32xf32>
    %109 = arith.mulf %104, %106 : vector<2x32xf32>
    %110 = arith.addf %108, %109 : vector<2x32xf32>
    %111 = math.tanh %110 : vector<2x32xf32>
    %112 = arith.mulf %107, %111 : vector<2x32xf32>
    %113 = vector.extract_strided_slice %8 {offsets = [5, 0], sizes = [1, 128], strides = [1, 1]} : vector<16x128xf32> to vector<1x128xf32>
    %114 = vector.extract_strided_slice %8 {offsets = [13, 0], sizes = [1, 128], strides = [1, 1]} : vector<16x128xf32> to vector<1x128xf32>
    %115 = tpu.concatenate %113, %114 in 0 : vector<1x128xf32>, vector<1x128xf32> -> vector<2x128xf32>
    %cst_23 = arith.constant dense<0.000000e+00> : vector<2x128xf32>
    %116 = tpu.matmul %112, %1, %cst_23 {dimension_numbers = #tpu.dot_dimension_numbers<[1], [0], [0], [1], [0, 0, 1, 1], [], []>} : vector<2x32xf32>, vector<32x128xf32>, vector<2x128xf32> -> vector<2x128xf32>
    %117 = arith.addf %115, %116 : vector<2x128xf32>
    %118 = arith.negf %117 : vector<2x128xf32>
    %119 = math.exp %118 : vector<2x128xf32>
    %cst_24 = arith.constant 1.000000e+00 : f32
    %120 = vector.broadcast %cst_24 : f32 to vector<2x128xf32>
    %121 = arith.addf %120, %119 : vector<2x128xf32>
    %122 = arith.divf %120, %121 : vector<2x128xf32>
    %123 = math.tanh %117 : vector<2x128xf32>
    %124 = vector.extract_strided_slice %122 {offsets = [0, 0], sizes = [2, 32], strides = [1, 1]} : vector<2x128xf32> to vector<2x32xf32>
    %125 = vector.extract_strided_slice %122 {offsets = [0, 32], sizes = [2, 32], strides = [1, 1]} : vector<2x128xf32> to vector<2x32xf32>
    %126 = vector.extract_strided_slice %123 {offsets = [0, 64], sizes = [2, 32], strides = [1, 1]} : vector<2x128xf32> to vector<2x32xf32>
    %127 = vector.extract_strided_slice %122 {offsets = [0, 96], sizes = [2, 32], strides = [1, 1]} : vector<2x128xf32> to vector<2x32xf32>
    %128 = arith.mulf %125, %110 : vector<2x32xf32>
    %129 = arith.mulf %124, %126 : vector<2x32xf32>
    %130 = arith.addf %128, %129 : vector<2x32xf32>
    %131 = math.tanh %130 : vector<2x32xf32>
    %132 = arith.mulf %127, %131 : vector<2x32xf32>
    %133 = vector.extract_strided_slice %8 {offsets = [6, 0], sizes = [1, 128], strides = [1, 1]} : vector<16x128xf32> to vector<1x128xf32>
    %134 = vector.extract_strided_slice %8 {offsets = [14, 0], sizes = [1, 128], strides = [1, 1]} : vector<16x128xf32> to vector<1x128xf32>
    %135 = tpu.concatenate %133, %134 in 0 : vector<1x128xf32>, vector<1x128xf32> -> vector<2x128xf32>
    %cst_25 = arith.constant dense<0.000000e+00> : vector<2x128xf32>
    %136 = tpu.matmul %132, %1, %cst_25 {dimension_numbers = #tpu.dot_dimension_numbers<[1], [0], [0], [1], [0, 0, 1, 1], [], []>} : vector<2x32xf32>, vector<32x128xf32>, vector<2x128xf32> -> vector<2x128xf32>
    %137 = arith.addf %135, %136 : vector<2x128xf32>
    %138 = arith.negf %137 : vector<2x128xf32>
    %139 = math.exp %138 : vector<2x128xf32>
    %cst_26 = arith.constant 1.000000e+00 : f32
    %140 = vector.broadcast %cst_26 : f32 to vector<2x128xf32>
    %141 = arith.addf %140, %139 : vector<2x128xf32>
    %142 = arith.divf %140, %141 : vector<2x128xf32>
    %143 = math.tanh %137 : vector<2x128xf32>
    %144 = vector.extract_strided_slice %142 {offsets = [0, 0], sizes = [2, 32], strides = [1, 1]} : vector<2x128xf32> to vector<2x32xf32>
    %145 = vector.extract_strided_slice %142 {offsets = [0, 32], sizes = [2, 32], strides = [1, 1]} : vector<2x128xf32> to vector<2x32xf32>
    %146 = vector.extract_strided_slice %143 {offsets = [0, 64], sizes = [2, 32], strides = [1, 1]} : vector<2x128xf32> to vector<2x32xf32>
    %147 = vector.extract_strided_slice %142 {offsets = [0, 96], sizes = [2, 32], strides = [1, 1]} : vector<2x128xf32> to vector<2x32xf32>
    %148 = arith.mulf %145, %130 : vector<2x32xf32>
    %149 = arith.mulf %144, %146 : vector<2x32xf32>
    %150 = arith.addf %148, %149 : vector<2x32xf32>
    %151 = math.tanh %150 : vector<2x32xf32>
    %152 = arith.mulf %147, %151 : vector<2x32xf32>
    %153 = vector.extract_strided_slice %8 {offsets = [7, 0], sizes = [1, 128], strides = [1, 1]} : vector<16x128xf32> to vector<1x128xf32>
    %154 = vector.extract_strided_slice %8 {offsets = [15, 0], sizes = [1, 128], strides = [1, 1]} : vector<16x128xf32> to vector<1x128xf32>
    %155 = tpu.concatenate %153, %154 in 0 : vector<1x128xf32>, vector<1x128xf32> -> vector<2x128xf32>
    %cst_27 = arith.constant dense<0.000000e+00> : vector<2x128xf32>
    %156 = tpu.matmul %152, %1, %cst_27 {dimension_numbers = #tpu.dot_dimension_numbers<[1], [0], [0], [1], [0, 0, 1, 1], [], []>} : vector<2x32xf32>, vector<32x128xf32>, vector<2x128xf32> -> vector<2x128xf32>
    %157 = arith.addf %155, %156 : vector<2x128xf32>
    %158 = arith.negf %157 : vector<2x128xf32>
    %159 = math.exp %158 : vector<2x128xf32>
    %cst_28 = arith.constant 1.000000e+00 : f32
    %160 = vector.broadcast %cst_28 : f32 to vector<2x128xf32>
    %161 = arith.addf %160, %159 : vector<2x128xf32>
    %162 = arith.divf %160, %161 : vector<2x128xf32>
    %163 = math.tanh %157 : vector<2x128xf32>
    %164 = vector.extract_strided_slice %162 {offsets = [0, 0], sizes = [2, 32], strides = [1, 1]} : vector<2x128xf32> to vector<2x32xf32>
    %165 = vector.extract_strided_slice %162 {offsets = [0, 32], sizes = [2, 32], strides = [1, 1]} : vector<2x128xf32> to vector<2x32xf32>
    %166 = vector.extract_strided_slice %163 {offsets = [0, 64], sizes = [2, 32], strides = [1, 1]} : vector<2x128xf32> to vector<2x32xf32>
    %167 = vector.extract_strided_slice %162 {offsets = [0, 96], sizes = [2, 32], strides = [1, 1]} : vector<2x128xf32> to vector<2x32xf32>
    %168 = arith.mulf %165, %150 : vector<2x32xf32>
    %169 = arith.mulf %164, %166 : vector<2x32xf32>
    %170 = arith.addf %168, %169 : vector<2x32xf32>
    %171 = math.tanh %170 : vector<2x32xf32>
    %172 = arith.mulf %167, %171 : vector<2x32xf32>
    %c0_29 = arith.constant 0 : index
    %c0_30 = arith.constant 0 : index
    %c0_31 = arith.constant 0 : index
    %173 = vector.load %arg5[%c0_29, %c0_30, %c0_31] : memref<1x2x32xf32, #tpu.memory_space<vmem>>, vector<1x2x32xf32>
    %174 = vector.shape_cast %173 : vector<1x2x32xf32> to vector<2x32xf32>
    %175 = vector.shape_cast %172 : vector<2x32xf32> to vector<1x2x32xf32>
    tpu.vector_store %arg5[%c0_29, %c0_30, %c0_31], %175 {strides = array<i32>} : memref<1x2x32xf32, #tpu.memory_space<vmem>>, vector<1x2x32xf32>,
    %c0_32 = arith.constant 0 : index
    %c0_33 = arith.constant 0 : index
    %c0_34 = arith.constant 0 : index
    %176 = vector.load %arg6[%c0_32, %c0_33, %c0_34] : memref<1x2x32xf32, #tpu.memory_space<vmem>>, vector<1x2x32xf32>
    %177 = vector.shape_cast %176 : vector<1x2x32xf32> to vector<2x32xf32>
    %178 = vector.shape_cast %170 : vector<2x32xf32> to vector<1x2x32xf32>
    tpu.vector_store %arg6[%c0_32, %c0_33, %c0_34], %178 {strides = array<i32>} : memref<1x2x32xf32, #tpu.memory_space<vmem>>, vector<1x2x32xf32>,
    %179 = vector.extract_strided_slice %32 {offsets = [0, 0], sizes = [1, 32], strides = [1, 1]} : vector<2x32xf32> to vector<1x32xf32>
    %180 = vector.extract_strided_slice %52 {offsets = [0, 0], sizes = [1, 32], strides = [1, 1]} : vector<2x32xf32> to vector<1x32xf32>
    %181 = vector.extract_strided_slice %72 {offsets = [0, 0], sizes = [1, 32], strides = [1, 1]} : vector<2x32xf32> to vector<1x32xf32>
    %182 = vector.extract_strided_slice %92 {offsets = [0, 0], sizes = [1, 32], strides = [1, 1]} : vector<2x32xf32> to vector<1x32xf32>
    %183 = vector.extract_strided_slice %112 {offsets = [0, 0], sizes = [1, 32], strides = [1, 1]} : vector<2x32xf32> to vector<1x32xf32>
    %184 = vector.extract_strided_slice %132 {offsets = [0, 0], sizes = [1, 32], strides = [1, 1]} : vector<2x32xf32> to vector<1x32xf32>
    %185 = vector.extract_strided_slice %152 {offsets = [0, 0], sizes = [1, 32], strides = [1, 1]} : vector<2x32xf32> to vector<1x32xf32>
    %186 = vector.extract_strided_slice %172 {offsets = [0, 0], sizes = [1, 32], strides = [1, 1]} : vector<2x32xf32> to vector<1x32xf32>
    %187 = vector.extract_strided_slice %32 {offsets = [1, 0], sizes = [1, 32], strides = [1, 1]} : vector<2x32xf32> to vector<1x32xf32>
    %188 = vector.extract_strided_slice %52 {offsets = [1, 0], sizes = [1, 32], strides = [1, 1]} : vector<2x32xf32> to vector<1x32xf32>
    %189 = vector.extract_strided_slice %72 {offsets = [1, 0], sizes = [1, 32], strides = [1, 1]} : vector<2x32xf32> to vector<1x32xf32>
    %190 = vector.extract_strided_slice %92 {offsets = [1, 0], sizes = [1, 32], strides = [1, 1]} : vector<2x32xf32> to vector<1x32xf32>
    %191 = vector.extract_strided_slice %112 {offsets = [1, 0], sizes = [1, 32], strides = [1, 1]} : vector<2x32xf32> to vector<1x32xf32>
    %192 = vector.extract_strided_slice %132 {offsets = [1, 0], sizes = [1, 32], strides = [1, 1]} : vector<2x32xf32> to vector<1x32xf32>
    %193 = vector.extract_strided_slice %152 {offsets = [1, 0], sizes = [1, 32], strides = [1, 1]} : vector<2x32xf32> to vector<1x32xf32>
    %194 = vector.extract_strided_slice %172 {offsets = [1, 0], sizes = [1, 32], strides = [1, 1]} : vector<2x32xf32> to vector<1x32xf32>
    %195 = tpu.concatenate %179, %180, %181, %182, %183, %184, %185, %186, %187, %188, %189, %190, %191, %192, %193, %194 in 0 : vector<1x32xf32>, vector<1x32xf32>, vector<1x32xf32>, vector<1x32xf32>, vector<1x32xf32>, vector<1x32xf32>, vector<1x32xf32>, vector<1x32xf32>, vector<1x32xf32>, vector<1x32xf32>, vector<1x32xf32>, vector<1x32xf32>, vector<1x32xf32>, vector<1x32xf32>, vector<1x32xf32>, vector<1x32xf32> -> vector<16x32xf32>
    %cst_35 = arith.constant dense<0.000000e+00> : vector<1x16xf32>
    %196 = tpu.matmul %3, %195, %cst_35 {dimension_numbers = #tpu.dot_dimension_numbers<[1], [1], [0], [0], [0, 0, 1, 0], [], []>} : vector<1x32xf32>, vector<16x32xf32>, vector<1x16xf32> -> vector<1x16xf32>
    %197 = vector.broadcast %4 : vector<1x1xf32> to vector<1x16xf32>
    %198 = arith.addf %196, %197 : vector<1x16xf32>
    %c0_36 = arith.constant 0 : index
    %c0_37 = arith.constant 0 : index
    %199 = vector.load %arg4[%c0_36, %c0_37] : memref<1x16xf32, #tpu.memory_space<vmem>>, vector<1x16xf32>
    tpu.vector_store %arg4[%c0_36, %c0_37], %198 {strides = array<i32>} : memref<1x16xf32, #tpu.memory_space<vmem>>, vector<1x16xf32>,
    return
  }
}

</mosaic_0001>

<bundles_post_ra>
// kernel: network_midi_forward.1
= control target key start
LH: loop header
LB: loop body
LE: loop exit
PB: predicated region body
PF: predicated region fallthrough
CT: control target
= control target key end

     0   :  { %12 = vsyncpa [#allocation3], 0  ;;  %s1465_s21 = smov [#allocation2]   ;;  %s1680_s0 = inlined_call_operand.vmem [shape: f32[16,4], index: 0, kind: input, shape index: {}]   ;;  %s1681_s1 = inlined_call_operand.vmem [shape: f32[1,2,32], index: 1, kind: input, shape index: {}, may-alias: {1,5}]   ;;  %s1682_s2 = inlined_call_operand.vmem [shape: f32[1,2,32], index: 2, kind: input, shape index: {}, may-alias: {2,6}]   ;;  %s1683_s3 = inlined_call_operand.hbm [shape: f32[48,128], index: 3, kind: input, shape index: {}]   ;;  %s1684_s4 = inlined_call_operand.vmem [shape: f32[1,16], index: 4, kind: output, shape index: {0}]   ;;  %s1685_s5 = inlined_call_operand.vmem [shape: f32[1,2,32], index: 5, kind: output, shape index: {1}, may-alias: {1,5}]   ;;  %s1686_s6 = inlined_call_operand.vmem [shape: f32[1,2,32], index: 6, kind: output, shape index: {2}, may-alias: {2,6}]  }
   0x1   :  { %s24_s22 = sshll.u32 %s1465_s21, 4  ;;  %s1441_s25 = scalar_lea.hbm %s1683_s3, 768  ;;  %s25_s22 = int_to_ptr.vmem [resolvable:$true] %s24_s22 }
   0x2   :  { %p1442_p0 = scmp.ne.s32.totalorder %s1683_s3, %s1441_s25  ;;  %p1445_p1 = scmp.lt.u32.totalorder %s1441_s25, %s1683_s3 }
   0x4   :  { %p1447_p2 = pnand %p1445_p1, %p1442_p0 }
   0x6   :  { %1450 = shalt.err (!%p1447_p2)
}
   0x7   :  { %s1451_s30 = scalar_lea.vmem %s25_s22, 768  ;;  %p1456_p4 = scmp.lt.s32.totalorder %s25_s22, %s25_s22 }
   0x8   :  { %p1452_p3 = scmp.ne.s32.totalorder %s25_s22, %s1451_s30  ;;  %p1457_p5 = scmp.lt.s32.totalorder %s1451_s30, %s1451_s30 }
   0xa   :  { %p1458_p6 = por %p1457_p5, %p1456_p4 }
   0xc   :  { %p1459_p7 = pnand %p1458_p6, %p1452_p3 }
   0xe   :  { %1462 = shalt.err (!%p1459_p7)
}
   0xf   :  { %s1466_s7 = smov 128   ;;  %s1467_s8 = smov 8  }
  0x10   :  { %30 = dma.hbm_to_vmem [thread:$0]  %s1683_s3, 768, %s25_s22, [#allocation3], %s1466_s7, %s1466_s7, %s1467_s8  }
  0x11   :  { %1463 = dma.done.wait [#allocation3], 768  }
  0x12   :  { %1464 = vsyncadd [#allocation3], 4294966528  ;;  %v1468_v0 = vmov 0.0|0.0   ;;  %vm1469_vm0 = vmmov 0   ;;  %v1470_v1 = vmov 0.0   ;;  %vm55_vm1 = vcmask 1043456  }
  0x13   :  { %1308 = vmatprep.subr.bf16.mxu1 %v1468_v0  ;;  %1221 = vmatprep.mubr.msk.f32.mxu1 %vm1469_vm0, %v1470_v1  ;;  %vm48_vm2 = vcmask 31744   ;;  %v34_v2 = vld [vmem:[#allocation2] sm:$0xf]  ;;  %v43_v4 = vld [vmem:[%s1680_s0 + $0x8] sm:$0xff]  ;;  %v36_v6 = vld [vmem:[#allocation2 + $0x10] sm:$0xff]  ;;  %vm141_vm3 = vcmask 261120  }
  0x14   :  { %v42_v3 = vld [vmem:[%s1680_s0] sm:$0xff]  ;;  %1208 = vmatprep.subr.msk.mxu0 %vm55_vm1, %v34_v2  ;;  %v35_v5 = vld [vmem:[#allocation2 + $0x8] sm:$0xff]  ;;  %v37_v7 = vld [vmem:[#allocation2 + $0x18] sm:$0xff]  ;;  %vm139_vm4 = vcmask 1040384   ;;  %s1472_s17 = smov 32   ;;  %vm1018_vm5 = vcmask 1041408  }
  0x15   :  { %1210 = vmatprep.mubr.msk.f32.mxu0 %vm48_vm2, %v42_v3  ;;  %1209 = vmatpush3.msk.msra.mxu0 %vm55_vm1, %v34_v2  ;;  %v1533_v8 = vpack.c.bf16 %v36_v6, %v35_v5  ;;  %v38_v9 = vld [vmem:[#allocation2 + $0x20] sm:$0xff]  ;;  %v1139_v12 = vld [vmem:[#allocation2 + $0x28] ss:$0 sm:$0xff]  ;;  %vm1020_vm6 = vcmask 1042432   ;;  %vm1023_vm7 = vcmask 1044480   ;;  %vm1025_vm8 = vcmask 1045504   ;;  %vm1358_vm11 = vmpackc.low %vm141_vm3, %vm141_vm3 }
  0x16   :  { %1211 = vmatmul.mubr.msk.f32.vlgmr.msra.gmra.mrb[0].mxu0 %vm48_vm2, %v43_v4  ;;  %1314 = vmatprep.subr.bf16.mxu0 %v1468_v0  ;;  %v1537_v10 = vpack.c.bf16 %v38_v9, %v37_v7  ;;  %v134_v11 = vld [vmem:[%s1681_s1] sm:$0x3]  ;;  %s1471_s1 = smov 64   ;;  %vm1027_vm9 = vcmask 1046528   ;;  %vm982_vm10 = vcmask 254976   ;;  %vm1124_vm12 = vcmask 122880  }
  0x17   :  { %1310 = vmatpush3.bf16.msra.mxu1 %v1533_v8  ;;  %1316 = vmatpush3.bf16.msra.mxu0 %v1533_v8  ;;  %v135_v43 = vld [vmem:[%s1682_s2] sm:$0x3]  ;;  %s1474_s2 = smov 96  }
  0x18   :  { %1311 = vmatprep.subr.bf16.mxu1 %v1468_v0  ;;  %1317 = vmatprep.subr.bf16.mxu0 %v1468_v0 }
  0x19   :  { %1232 = vmatprep.mubr.msk.f32.mxu0 %vm1469_vm0, %v1470_v1 }
  0x1b   :  { %1313 = vmatpush3.bf16.msra.mxu1 %v1537_v10  ;;  %1319 = vmatpush3.bf16.msra.mxu0 %v1537_v10 }
  0x1c   :  { %1320 = vmatprep.subr.bf16.mxu1 %v1468_v0  ;;  %1326 = vmatprep.subr.bf16.mxu0 %v1468_v0 }
  0x1e   :  { %1222 = vmatmul.mubr.msk.f32.vlgmr.msra.gmra.mrb[0].mxu1 %vm141_vm3, %v134_v11 }
  0x1f   :  { %1322 = vmatpush3.bf16.msra.mxu1 %v1533_v8  ;;  %1243 = vmatprep.mubr.msk.f32.mxu1 %vm1469_vm0, %v1470_v1 }
  0x20   :  { %1323 = vmatprep.subr.bf16.mxu1 %v1468_v0 }
  0x23   :  { %1325 = vmatpush3.bf16.msra.mxu1 %v1537_v10 }
  0x24   :  { %1332 = vmatprep.subr.bf16.mxu1 %v1468_v0 }
  0xe9   :  { %v1212_v13 = vpop.f32.mrb[0].mxu0 }
  0xea   :  { %v131_v14 = vadd.f32 %v1212_v13, %v1139_v12  ;;  %v125_v15 = vpop.f32.mrb[1].mxu0 }
  0xeb   :  { %v126_v16 = vadd.f32 %v1139_v12, %v125_v15 }
  0xec   :  { %v137_v17 = vrot.slane %v131_v14, 7  ;;  %v350_v18 = vrot.slane %v131_v14, 1  ;;  %v455_v19 = vrot.slane %v131_v14, 2  ;;  %v560_v20 = vrot.slane %v131_v14, 3 }
  0xed   :  { %v245_v21 = vrot.slane %v126_v16, 1  ;;  %v348_v22 = vrot.slane %v126_v16, 2  ;;  %v453_v23 = vrot.slane %v126_v16, 3  ;;  %v558_v24 = vrot.slane %v126_v16, 4 }
  0xee   :  { %v140_v25 = vsel %vm139_vm4, %v126_v16, %v137_v17  ;;  %v663_v26 = vrot.slane %v126_v16, 5  ;;  %v665_v27 = vrot.slane %v131_v14, 4  ;;  %v768_v28 = vrot.slane %v126_v16, 6 }
  0xef   :  { %v247_v29 = vsel %vm139_vm4, %v245_v21, %v131_v14  ;;  %v1561_v30 = vsel %vm139_vm4, %v348_v22, %v350_v18  ;;  %v1564_v31 = vsel %vm139_vm4, %v453_v23, %v455_v19  ;;  %v1567_v32 = vsel %vm139_vm4, %v558_v24, %v560_v20 }
  0xf0   :  { %v1570_v33 = vsel %vm139_vm4, %v663_v26, %v665_v27  ;;  %v770_v34 = vrot.slane %v131_v14, 5  ;;  %v873_v35 = vrot.slane %v126_v16, 7  ;;  %v875_v36 = vrot.slane %v131_v14, 6 }
  0xf1   :  { %v211_v37 = vpop.f32.mrb[0].mxu1 }
  0xf2   :  { %v215_v38 = vadd.f32 %v211_v37, %v140_v25  ;;  %v1223_v39 = vpop.f32.mrb[1].mxu1  ;;  %v1573_v40 = vsel %vm139_vm4, %v768_v28, %v770_v34  ;;  %v1576_v41 = vsel %vm139_vm4, %v873_v35, %v875_v36 }
  0xf4   :  { %1377 = vtanh.f32 %v215_v38  ;;  %v1144_v44 = vmul.f32 -1.442695, %v215_v38 }
  0xf6   :  { %1379 = vpow2.f32 %v1144_v44 }
  0xfe   :  { %v1378_v42 = vpop.eup %1377 }
  0xff   :  { %229 = vrot.lane.b32.xlu0 %v1378_v42, %s1471_s1 }
 0x100   :  { %v1380_v45 = vpop.eup %1379 }
 0x101   :  { %v219_v46 = vadd.f32 1.0, %v1380_v45 }
 0x103   :  { %224 = vrot.lane.b32.xlu0 %v135_v43, %s1472_s17  ;;  %1381 = vrcp.f32 %v219_v46 }
 0x10d   :  { %v1382_v47 = vpop.eup %1381 }
 0x171   :  { %v230_v48 = vpop.permute.xlu0 %229 }
 0x172   :  { %v232_v49 = vmul.f32 %v1382_v47, %v230_v48 }
 0x174   :  { %234 = vrot.lane.b32.xlu1 %v232_v49, %s1472_s17 }
 0x175   :  { %v225_v50 = vpop.permute.xlu0 %224 }
 0x176   :  { %v227_v51 = vmul.f32 %v1382_v47, %v225_v50 }
 0x1e6   :  { %v235_v52 = vpop.permute.xlu1 %234 }
 0x1e7   :  { %v237_v53 = vadd.f32 %v235_v52, %v227_v51 }
 0x1e9   :  { %1383 = vtanh.f32 %v237_v53 }
 0x1f3   :  { %v1384_v54 = vpop.eup %1383 }
 0x1f4   :  { %240 = vrot.lane.b32.xlu1 %v1384_v54, %s1471_s1 }
 0x266   :  { %v241_v55 = vpop.permute.xlu1 %240 }
 0x267   :  { %v1585_v56 = vmul.f32 %v1382_v47, %v241_v55 }
 0x269   :  { %249 = vrot.lane.b32.xlu0 %v1585_v56, %s1472_s17  ;;  %v1003_v35 = vrot.slane %v1585_v56, 1 }
 0x2db   :  { %v250_v57 = vpop.permute.xlu0 %249 }
 0x2dc   :  { %1233 = vmatmul.mubr.msk.f32.vlgmr.msra.gmra.mrb[2].mxu0 %vm141_vm3, %v250_v57 }
 0x2dd   :  { %1328 = vmatpush3.bf16.msra.mxu0 %v1533_v8  ;;  %1254 = vmatprep.mubr.msk.f32.mxu0 %vm1469_vm0, %v1470_v1 }
 0x2de   :  { %1329 = vmatprep.subr.bf16.mxu0 %v1468_v0 }
 0x2e1   :  { %1331 = vmatpush3.bf16.msra.mxu0 %v1537_v10 }
 0x2e2   :  { %1338 = vmatprep.subr.bf16.mxu0 %v1468_v0 }
 0x3af   :  { %v319_v58 = vpop.f32.mrb[2].mxu0 }
 0x3b0   :  { %v323_v59 = vadd.f32 %v319_v58, %v247_v29  ;;  %v1234_v60 = vpop.f32.mrb[3].mxu0 }
 0x3b2   :  { %1385 = vtanh.f32 %v323_v59  ;;  %v1146_v62 = vmul.f32 -1.442695, %v323_v59 }
 0x3b4   :  { %1387 = vpow2.f32 %v1146_v62 }
 0x3bc   :  { %v1386_v61 = vpop.eup %1385 }
 0x3bd   :  { %333 = vrot.lane.b32.xlu1 %v1386_v61, %s1471_s1 }
 0x3be   :  { %v1388_v63 = vpop.eup %1387 }
 0x3bf   :  { %v327_v2 = vadd.f32 1.0, %v1388_v63 }
 0x3c1   :  { %1389 = vrcp.f32 %v327_v2 }
 0x3cb   :  { %v1390_v3 = vpop.eup %1389 }
 0x3cc   :  { %v331_v6 = vmul.f32 %v1390_v3, %v237_v53 }
 0x42f   :  { %v334_v4 = vpop.permute.xlu1 %333 }
 0x430   :  { %v336_v5 = vmul.f32 %v1390_v3, %v334_v4 }
 0x432   :  { %338 = vrot.lane.b32.xlu0 %v336_v5, %s1472_s17 }
 0x4a4   :  { %v339_v7 = vpop.permute.xlu0 %338 }
 0x4a5   :  { %v341_v9 = vadd.f32 %v339_v7, %v331_v6 }
 0x4a7   :  { %1391 = vtanh.f32 %v341_v9 }
 0x4b1   :  { %v1392_v11 = vpop.eup %1391 }
 0x4b2   :  { %344 = vrot.lane.b32.xlu1 %v1392_v11, %s1471_s1 }
 0x524   :  { %v345_v12 = vpop.permute.xlu1 %344 }
 0x525   :  { %v347_v13 = vmul.f32 %v1390_v3, %v345_v12 }
 0x527   :  { %354 = vrot.lane.b32.xlu0 %v347_v13, %s1472_s17  ;;  %v989_v29 = vrot.slane %v347_v13, 7  ;;  %v1029_v39 = vsel %vm139_vm4, %v1003_v35, %v347_v13 }
 0x529   :  { %v1017_v38 = vsel %vm139_vm4, %v1585_v56, %v989_v29 }
 0x599   :  { %v355_v14 = vpop.permute.xlu0 %354 }
 0x59a   :  { %1244 = vmatmul.mubr.msk.f32.vlgmr.msra.gmra.mrb[2].mxu1 %vm141_vm3, %v355_v14 }
 0x59b   :  { %1334 = vmatpush3.bf16.msra.mxu1 %v1533_v8  ;;  %1265 = vmatprep.mubr.msk.f32.mxu1 %vm1469_vm0, %v1470_v1 }
 0x59c   :  { %1335 = vmatprep.subr.bf16.mxu1 %v1468_v0 }
 0x59f   :  { %1337 = vmatpush3.bf16.msra.mxu1 %v1537_v10 }
 0x5a0   :  { %1344 = vmatprep.subr.bf16.mxu1 %v1468_v0 }
 0x66d   :  { %v424_v15 = vpop.f32.mrb[2].mxu1 }
 0x66e   :  { %v428_v16 = vadd.f32 %v424_v15, %v1561_v30  ;;  %v1245_v17 = vpop.f32.mrb[3].mxu1 }
 0x670   :  { %1393 = vtanh.f32 %v428_v16  ;;  %v1148_v19 = vmul.f32 -1.442695, %v428_v16 }
 0x672   :  { %1395 = vpow2.f32 %v1148_v19 }
 0x67a   :  { %v1394_v18 = vpop.eup %1393 }
 0x67b   :  { %438 = vrot.lane.b32.xlu1 %v1394_v18, %s1471_s1 }
 0x67c   :  { %v1396_v20 = vpop.eup %1395 }
 0x67d   :  { %v432_v21 = vadd.f32 1.0, %v1396_v20 }
 0x67f   :  { %1397 = vrcp.f32 %v432_v21 }
 0x689   :  { %v1398_v22 = vpop.eup %1397 }
 0x68a   :  { %v436_v25 = vmul.f32 %v1398_v22, %v341_v9 }
 0x6ed   :  { %v439_v23 = vpop.permute.xlu1 %438 }
 0x6ee   :  { %v441_v24 = vmul.f32 %v1398_v22, %v439_v23 }
 0x6f0   :  { %443 = vrot.lane.b32.xlu0 %v441_v24, %s1472_s17 }
 0x762   :  { %v444_v26 = vpop.permute.xlu0 %443 }
 0x763   :  { %v446_v27 = vadd.f32 %v444_v26, %v436_v25 }
 0x765   :  { %1399 = vtanh.f32 %v446_v27 }
 0x76f   :  { %v1400_v28 = vpop.eup %1399 }
 0x770   :  { %449 = vrot.lane.b32.xlu1 %v1400_v28, %s1471_s1 }
 0x7e2   :  { %v450_v30 = vpop.permute.xlu1 %449 }
 0x7e3   :  { %v452_v34 = vmul.f32 %v1398_v22, %v450_v30 }
 0x7e5   :  { %v991_v36 = vrot.slane %v452_v34, 6  ;;  %v1005_v37 = vrot.slane %v452_v34, 7  ;;  %459 = vrot.lane.b32.xlu0 %v452_v34, %s1472_s17 }
 0x7e7   :  { %v1019_v42 = vsel %vm1018_vm5, %v1017_v38, %v991_v36  ;;  %v1030_v43 = vsel %vm1018_vm5, %v1029_v39, %v1005_v37 }
 0x857   :  { %v460_v44 = vpop.permute.xlu0 %459 }
 0x858   :  { %1255 = vmatmul.mubr.msk.f32.vlgmr.msra.gmra.mrb[4].mxu0 %vm141_vm3, %v460_v44 }
 0x859   :  { %1340 = vmatpush3.bf16.msra.mxu0 %v1533_v8  ;;  %1276 = vmatprep.mubr.msk.f32.mxu0 %vm1469_vm0, %v1470_v1 }
 0x85a   :  { %1341 = vmatprep.subr.bf16.mxu0 %v1468_v0 }
 0x85d   :  { %1343 = vmatpush3.bf16.msra.mxu0 %v1537_v10 }
 0x85e   :  { %1350 = vmatprep.subr.bf16.mxu0 %v1468_v0 }
 0x92b   :  { %v529_v45 = vpop.f32.mrb[4].mxu0 }
 0x92c   :  { %v533_v46 = vadd.f32 %v529_v45, %v1564_v31  ;;  %v1256_v47 = vpop.f32.mrb[5].mxu0 }
 0x92e   :  { %1401 = vtanh.f32 %v533_v46  ;;  %v1150_v49 = vmul.f32 -1.442695, %v533_v46 }
 0x930   :  { %1403 = vpow2.f32 %v1150_v49 }
 0x938   :  { %v1402_v48 = vpop.eup %1401 }
 0x939   :  { %543 = vrot.lane.b32.xlu1 %v1402_v48, %s1471_s1 }
 0x93a   :  { %v1404_v50 = vpop.eup %1403 }
 0x93b   :  { %v537_v51 = vadd.f32 1.0, %v1404_v50 }
 0x93d   :  { %1405 = vrcp.f32 %v537_v51 }
 0x947   :  { %v1406_v52 = vpop.eup %1405 }
 0x948   :  { %v541_v55 = vmul.f32 %v1406_v52, %v446_v27 }
 0x9ab   :  { %v544_v53 = vpop.permute.xlu1 %543 }
 0x9ac   :  { %v546_v54 = vmul.f32 %v1406_v52, %v544_v53 }
 0x9ae   :  { %548 = vrot.lane.b32.xlu0 %v546_v54, %s1472_s17 }
 0xa20   :  { %v549_v56 = vpop.permute.xlu0 %548 }
 0xa21   :  { %v551_v57 = vadd.f32 %v549_v56, %v541_v55 }
 0xa23   :  { %1407 = vtanh.f32 %v551_v57 }
 0xa2d   :  { %v1408_v31 = vpop.eup %1407 }
 0xa2e   :  { %554 = vrot.lane.b32.xlu1 %v1408_v31, %s1471_s1 }
 0xaa0   :  { %v555_v58 = vpop.permute.xlu1 %554 }
 0xaa1   :  { %v557_v59 = vmul.f32 %v1406_v52, %v555_v58 }
 0xaa3   :  { %v993_v60 = vrot.slane %v557_v59, 5  ;;  %v1007_v61 = vrot.slane %v557_v59, 6  ;;  %564 = vrot.lane.b32.xlu0 %v557_v59, %s1472_s17 }
 0xaa5   :  { %v1021_v62 = vsel %vm1020_vm6, %v1019_v42, %v993_v60  ;;  %v1031_v63 = vsel %vm1020_vm6, %v1030_v43, %v1007_v61 }
 0xb15   :  { %v565_v2 = vpop.permute.xlu0 %564 }
 0xb16   :  { %1266 = vmatmul.mubr.msk.f32.vlgmr.msra.gmra.mrb[4].mxu1 %vm141_vm3, %v565_v2 }
 0xb17   :  { %1346 = vmatpush3.bf16.msra.mxu1 %v1533_v8  ;;  %1287 = vmatprep.mubr.msk.f32.mxu1 %vm1469_vm0, %v1470_v1 }
 0xb18   :  { %1347 = vmatprep.subr.bf16.mxu1 %v1468_v0 }
 0xb1b   :  { %1349 = vmatpush3.bf16.msra.mxu1 %v1537_v10 }
 0xb1c   :  { %1356 = vmatprep.subr.bf16.mxu1 %v1468_v0 }
 0xbe9   :  { %v634_v3 = vpop.f32.mrb[4].mxu1 }
 0xbea   :  { %v638_v4 = vadd.f32 %v634_v3, %v1567_v32  ;;  %v1267_v5 = vpop.f32.mrb[5].mxu1 }
 0xbec   :  { %1409 = vtanh.f32 %v638_v4  ;;  %v1152_v7 = vmul.f32 -1.442695, %v638_v4 }
 0xbee   :  { %1411 = vpow2.f32 %v1152_v7 }
 0xbf6   :  { %v1410_v6 = vpop.eup %1409 }
 0xbf7   :  { %648 = vrot.lane.b32.xlu1 %v1410_v6, %s1471_s1 }
 0xbf8   :  { %v1412_v9 = vpop.eup %1411 }
 0xbf9   :  { %v642_v11 = vadd.f32 1.0, %v1412_v9 }
 0xbfb   :  { %1413 = vrcp.f32 %v642_v11 }
 0xc05   :  { %v1414_v12 = vpop.eup %1413 }
 0xc06   :  { %v646_v15 = vmul.f32 %v1414_v12, %v551_v57 }
 0xc69   :  { %v649_v13 = vpop.permute.xlu1 %648 }
 0xc6a   :  { %v651_v14 = vmul.f32 %v1414_v12, %v649_v13 }
 0xc6c   :  { %653 = vrot.lane.b32.xlu0 %v651_v14, %s1472_s17 }
 0xcde   :  { %v654_v16 = vpop.permute.xlu0 %653 }
 0xcdf   :  { %v656_v17 = vadd.f32 %v654_v16, %v646_v15  ;;  %v1473_v15 = vmov 0  }
 0xce0   :  { %1375 = vset.pattern.permute.xlu1 %v1473_v15  ;;  %1376 = vset.pattern.permute.xlu0 %v1473_v15 }
 0xce1   :  { %1415 = vtanh.f32 %v656_v17 }
 0xceb   :  { %v1416_v32 = vpop.eup %1415 }
 0xcec   :  { %659 = vrot.lane.b32.xlu1 %v1416_v32, %s1471_s1 }
 0xd5e   :  { %v660_v18 = vpop.permute.xlu1 %659 }
 0xd5f   :  { %v662_v19 = vmul.f32 %v1414_v12, %v660_v18  ;;  %v41_v18 = vld [vmem:[#allocation2 + $0x2a] sm:$0x1] }
 0xd61   :  { %v995_v20 = vrot.slane %v662_v19, 4  ;;  %v1009_v21 = vrot.slane %v662_v19, 5  ;;  %669 = vrot.lane.b32.xlu0 %v662_v19, %s1472_s17 }
 0xd63   :  { %v1022_v22 = vsel %vm55_vm1, %v1021_v62, %v995_v20  ;;  %v1032_v23 = vsel %vm55_vm1, %v1031_v63, %v1009_v21 }
 0xdd3   :  { %v670_v24 = vpop.permute.xlu0 %669 }
 0xdd4   :  { %1277 = vmatmul.mubr.msk.f32.vlgmr.msra.gmra.mrb[6].mxu0 %vm141_vm3, %v670_v24 }
 0xdd5   :  { %1352 = vmatpush3.bf16.msra.mxu0 %v1533_v8  ;;  %1298 = vmatprep.mubr.msk.f32.mxu0 %vm1469_vm0, %v1470_v1 }
 0xdd6   :  { %1353 = vmatprep.subr.bf16.mxu0 %v1468_v0 }
 0xdd9   :  { %1355 = vmatpush3.bf16.msra.mxu0 %v1537_v10 }
 0xea7   :  { %v739_v25 = vpop.f32.mrb[6].mxu0 }
 0xea8   :  { %v743_v26 = vadd.f32 %v739_v25, %v1570_v33  ;;  %v1278_v27 = vpop.f32.mrb[7].mxu0 }
 0xeaa   :  { %1417 = vtanh.f32 %v743_v26  ;;  %v1154_v29 = vmul.f32 -1.442695, %v743_v26 }
 0xeac   :  { %1419 = vpow2.f32 %v1154_v29 }
 0xeb4   :  { %v1418_v28 = vpop.eup %1417 }
 0xeb5   :  { %753 = vrot.lane.b32.xlu1 %v1418_v28, %s1471_s1 }
 0xeb6   :  { %v1420_v30 = vpop.eup %1419 }
 0xeb7   :  { %v747_v34 = vadd.f32 1.0, %v1420_v30 }
 0xeb9   :  { %1421 = vrcp.f32 %v747_v34 }
 0xec3   :  { %v1422_v8 = vpop.eup %1421 }
 0xec4   :  { %v751_v0 = vmul.f32 %v1422_v8, %v656_v17 }
 0xf27   :  { %v754_v35 = vpop.permute.xlu1 %753 }
 0xf28   :  { %v756_v36 = vmul.f32 %v1422_v8, %v754_v35  ;;  %v40_v35 = vld [vmem:[#allocation2 + $0x29] sm:$0x1] }
 0xf2a   :  { %758 = vrot.lane.b32.xlu0 %v756_v36, %s1472_s17 }
 0xf9c   :  { %v759_v10 = vpop.permute.xlu0 %758 }
 0xf9d   :  { %v761_v37 = vadd.f32 %v759_v10, %v751_v0 }
 0xf9f   :  { %1423 = vtanh.f32 %v761_v37 }
 0xfa9   :  { %v1424_v33 = vpop.eup %1423 }
 0xfaa   :  { %764 = vrot.lane.b32.xlu1 %v1424_v33, %s1471_s1 }
0x101c   :  { %v765_v38 = vpop.permute.xlu1 %764 }
0x101d   :  { %v767_v39 = vmul.f32 %v1422_v8, %v765_v38 }
0x101f   :  { %v997_v42 = vrot.slane %v767_v39, 3  ;;  %v1011_v43 = vrot.slane %v767_v39, 4  ;;  %774 = vrot.lane.b32.xlu0 %v767_v39, %s1472_s17 }
0x1021   :  { %v1024_v44 = vsel %vm1023_vm7, %v1022_v22, %v997_v42  ;;  %v1033_v45 = vsel %vm1023_vm7, %v1032_v23, %v1011_v43 }
0x1091   :  { %v775_v46 = vpop.permute.xlu0 %774 }
0x1092   :  { %1288 = vmatmul.mubr.msk.f32.vlgmr.msra.gmra.mrb[6].mxu1 %vm141_vm3, %v775_v46 }
0x1093   :  { %1305 = vmatprep.mubr.msk.f32.mxu1 %vm1469_vm0, %v1470_v1 }
0x1165   :  { %v844_v47 = vpop.f32.mrb[6].mxu1 }
0x1166   :  { %v848_v48 = vadd.f32 %v844_v47, %v1573_v40  ;;  %v1289_v49 = vpop.f32.mrb[7].mxu1 }
0x1168   :  { %1425 = vtanh.f32 %v848_v48  ;;  %v1156_v51 = vmul.f32 -1.442695, %v848_v48 }
0x116a   :  { %1427 = vpow2.f32 %v1156_v51 }
0x1172   :  { %v1426_v50 = vpop.eup %1425 }
0x1173   :  { %858 = vrot.lane.b32.xlu1 %v1426_v50, %s1471_s1 }
0x1174   :  { %v1428_v52 = vpop.eup %1427 }
0x1175   :  { %v852_v53 = vadd.f32 1.0, %v1428_v52 }
0x1177   :  { %1429 = vrcp.f32 %v852_v53 }
0x1181   :  { %v1430_v54 = vpop.eup %1429 }
0x1182   :  { %v856_v57 = vmul.f32 %v1430_v54, %v761_v37 }
0x11e5   :  { %v859_v55 = vpop.permute.xlu1 %858 }
0x11e6   :  { %v861_v56 = vmul.f32 %v1430_v54, %v859_v55 }
0x11e8   :  { %863 = vrot.lane.b32.xlu0 %v861_v56, %s1472_s17 }
0x125a   :  { %v864_v1 = vpop.permute.xlu0 %863 }
0x125b   :  { %v866_v31 = vadd.f32 %v864_v1, %v856_v57 }
0x125d   :  { %1431 = vtanh.f32 %v866_v31 }
0x1267   :  { %v1432_v40 = vpop.eup %1431 }
0x1268   :  { %869 = vrot.lane.b32.xlu1 %v1432_v40, %s1471_s1 }
0x12da   :  { %v870_v58 = vpop.permute.xlu1 %869 }
0x12db   :  { %v872_v59 = vmul.f32 %v1430_v54, %v870_v58 }
0x12dd   :  { %v999_v60 = vrot.slane %v872_v59, 2  ;;  %v1013_v61 = vrot.slane %v872_v59, 3  ;;  %879 = vrot.lane.b32.xlu0 %v872_v59, %s1472_s17 }
0x12df   :  { %v1026_v62 = vsel %vm1025_vm8, %v1024_v44, %v999_v60  ;;  %v1034_v63 = vsel %vm1025_vm8, %v1033_v45, %v1013_v61 }
0x134f   :  { %v880_v2 = vpop.permute.xlu0 %879 }
0x1350   :  { %1299 = vmatmul.mubr.msk.f32.vlgmr.msra.gmra.mrb[8].mxu0 %vm141_vm3, %v880_v2 }
0x1423   :  { %v949_v3 = vpop.f32.mrb[8].mxu0 }
0x1424   :  { %v953_v4 = vadd.f32 %v949_v3, %v1576_v41  ;;  %v1300_v5 = vpop.f32.mrb[9].mxu0 }
0x1426   :  { %1433 = vtanh.f32 %v953_v4  ;;  %v1158_v7 = vmul.f32 -1.442695, %v953_v4 }
0x1428   :  { %1435 = vpow2.f32 %v1158_v7 }
0x1430   :  { %v1434_v6 = vpop.eup %1433 }
0x1431   :  { %963 = vrot.lane.b32.xlu1 %v1434_v6, %s1471_s1 }
0x1432   :  { %v1436_v9 = vpop.eup %1435 }
0x1433   :  { %v957_v11 = vadd.f32 1.0, %v1436_v9 }
0x1435   :  { %1437 = vrcp.f32 %v957_v11 }
0x143f   :  { %v1438_v12 = vpop.eup %1437 }
0x1440   :  { %v961_v16 = vmul.f32 %v1438_v12, %v866_v31 }
0x14a3   :  { %v964_v13 = vpop.permute.xlu1 %963 }
0x14a4   :  { %v966_v14 = vmul.f32 %v1438_v12, %v964_v13 }
0x14a6   :  { %968 = vrot.lane.b32.xlu0 %v966_v14, %s1472_s17 }
0x1518   :  { %v969_v41 = vpop.permute.xlu0 %968 }
0x1519   :  { %v971_v17 = vadd.f32 %v969_v41, %v961_v16 }
0x151b   :  { %1439 = vtanh.f32 %v971_v17 }
0x1525   :  { %v1440_v32 = vpop.eup %1439 }
0x1526   :  { %974 = vrot.lane.b32.xlu1 %v1440_v32, %s1471_s1 }
0x152a   :  { %1038 = vperm.xlu1 %1375, %v41_v18  }
0x152e   :  { %985 = vrot.lane.b32.xlu1 %v971_v17, %s1474_s2 }
0x1598   :  { %v975_v19 = vpop.permute.xlu1 %974 }
0x1599   :  { %v977_v20 = vmul.f32 %v1438_v12, %v975_v19 }
0x159b   :  { %v1001_v21 = vrot.slane %v977_v20, 1  ;;  %v1015_v22 = vrot.slane %v977_v20, 2 }
0x159d   :  { %v1028_v23 = vsel %vm1027_vm9, %v1026_v62, %v1001_v21  ;;  %v1035_v24 = vsel %vm1027_vm9, %v1034_v63, %v1015_v22 }
0x159e   :  { %v1370_v25 = vpack.i.bf16 %v1035_v24, %v1028_v23 }
0x15a0   :  { %1371 = vrot.lane.b32.xlu0 %v1370_v25, %s1472_s17 }
0x15a4   :  { %979 = vrot.lane.b32.xlu0 %v977_v20, %s1472_s17 }
0x15a9   :  { %v1039_v26 = vpop.permute.xlu1 %1038 }
0x15ad   :  { %v986_v27 = vpop.permute.xlu1 %985 }
0x15ae   :  { %988 = vst.msk [vmem:[%s1686_s6] sm:$0x3] %vm982_vm10, %v986_v27 }
0x1612   :  { %v1372_v28 = vpop.permute.xlu0 %1371 }
0x1613   :  { %v1374_v29 = vunpack.i.h.bf16 %v1372_v28  ;;  %v1373_v30 = vunpack.i.l.bf16 %v1372_v28 }
0x1615   :  { %v1357_v34 = vpack.c.bf16 %v1374_v29, %v1373_v30 }
0x1616   :  { %v980_v8 = vpop.permute.xlu0 %979 }
0x1617   :  { %983 = vst.msk [vmem:[%s1685_s5] sm:$0x3] %vm982_vm10, %v980_v8  ;;  %1359 = vmatpush3.bf16.xpose.msk.msra.mxu1 %vm1358_vm11, %v1357_v34 }
0x161e   :  { %1306 = vmatmul.mubr.msk.f32.vlgmr.msra.gmra.mrb[8].mxu1 %vm141_vm3, %v40_v35 }
0x16f1   :  { %v1120_v36 = vpop.f32.mrb[8].mxu1 }
0x16f2   :  { %v1121_v0 = vadd.f32 %v1120_v36, %v1039_v26  ;;  %v1307_v10 = vpop.f32.mrb[9].mxu1 }
0x16f4   :  { %1125 = vst.msk [vmem:[%s1684_s4] sm:$0x1] %vm1124_vm12, %v1121_v0 }
0x16f5   :  { %1138 = vsyncpa [#allocation3], 1 }

</bundles_post_ra>
